<compile_context>
chip_gen: v5e
topology: v5e:2x2
jax: 0.10.0
libtpu: 0.0.40
codegen_flags: <defaults>
</compile_context>

<pallas_src>
import functools
import math

import jax
import jax.numpy as jnp
from jax.experimental import pallas as pl
from jax.experimental.pallas import tpu as pltpu


def _nonlin_attention_kernel(x_ref, attn_ref, w_in_ref, b_in_ref,
                             w_out_ref, b_out_ref, out_ref,
                             *, num_heads: int, hidden: int):
    """One batch element.

    x_ref:     (S, C)        input activations
    attn_ref:  (NH, S, S)    attention weights for this batch element
    w_in_ref:  (C, 3H)       in_proj weight (columns: [s | v | y])
    b_in_ref:  (1, 3H)       in_proj bias
    w_out_ref: (H, C)        out_proj weight
    b_out_ref: (1, C)        out_proj bias
    out_ref:   (S, C)        output
    """
    x = x_ref[...]
    in_dtype = x.dtype

    # in_proj, f32 accumulation on the MXU.
    proj = jnp.dot(x, w_in_ref[...], preferred_element_type=jnp.float32)
    proj = proj + b_in_ref[...].astype(jnp.float32)

    h_dim = hidden
    s = jnp.tanh(proj[:, 0:h_dim])                       # (S, H)
    v = proj[:, h_dim:2 * h_dim] * s                     # gated value, (S, H) f32
    y = proj[:, 2 * h_dim:3 * h_dim]                     # (S, H) f32

    # Per-head attention: att[:, h*hd:(h+1)*hd] = attn[h] @ v[:, h*hd:(h+1)*hd]
    head_dim = h_dim // num_heads
    v_cast = v.astype(in_dtype)
    att_heads = []
    for h in range(num_heads):                           # static unroll, static slices
        a_h = attn_ref[h]                                # (S, S)
        v_h = v_cast[:, h * head_dim:(h + 1) * head_dim]  # (S, head_dim)
        att_heads.append(
            jnp.dot(a_h, v_h, preferred_element_type=jnp.float32))
    att = jnp.concatenate(att_heads, axis=-1)            # (S, H) f32

    z = (att * y).astype(in_dtype)                       # gate by y

    out = jnp.dot(z, w_out_ref[...], preferred_element_type=jnp.float32)
    out = out + b_out_ref[...].astype(jnp.float32)
    out_ref[...] = out.astype(out_ref.dtype)


def nonlin_attention_forward(x, attn_weights, w_in, b_in, w_out, b_out,
                             *, num_heads: int):
    """x: (S, B, C); attn_weights: (NH, B, S, S). Returns (S, B, C)."""
    S, B, C = x.shape
    NH = attn_weights.shape[0]
    assert attn_weights.shape == (num_heads, B, S, S)
    H = w_in.shape[1] // 3
    assert w_in.shape == (C, 3 * H)
    assert w_out.shape == (H, C)
    assert H % num_heads == 0

    # Batch-major layouts so the grid walks the independent batch axis.
    xb = jnp.transpose(x, (1, 0, 2))                       # (B, S, C)
    attnb = jnp.transpose(attn_weights, (1, 0, 2, 3))      # (B, NH, S, S)
    b_in2 = b_in.reshape(1, 3 * H)
    b_out2 = b_out.reshape(1, C)

    kernel = functools.partial(_nonlin_attention_kernel,
                               num_heads=num_heads, hidden=H)

    outb = pl.pallas_call(
        kernel,
        out_shape=jax.ShapeDtypeStruct((B, S, C), x.dtype),
        grid=(B,),
        in_specs=[
            # per-batch tiles (leading batch dim squeezed away in the kernel)
            pl.BlockSpec((None, S, C), lambda b: (b, 0, 0)),
            pl.BlockSpec((None, NH, S, S), lambda b: (b, 0, 0, 0)),
            # weights / biases: constant index_map -> stay resident in VMEM
            pl.BlockSpec((C, 3 * H), lambda b: (0, 0)),
            pl.BlockSpec((1, 3 * H), lambda b: (0, 0)),
            pl.BlockSpec((H, C), lambda b: (0, 0)),
            pl.BlockSpec((1, C), lambda b: (0, 0)),
        ],
        out_specs=pl.BlockSpec((None, S, C), lambda b: (b, 0, 0)),
        compiler_params=pltpu.CompilerParams(
            dimension_semantics=("parallel",),
        ),
    )(xb, attnb, w_in, b_in2, w_out, b_out2)

    return jnp.transpose(outb, (1, 0, 2))                  # back to (S, B, C)


def nonlin_attention_reference(x, attn_weights, w_in, b_in, w_out, b_out,
                               *, num_heads: int):
    """Pure-JAX reference mirroring the PyTorch forward (eval path)."""
    S, B, C = x.shape
    H = w_in.shape[1] // 3
    hd = H // num_heads
    proj = jnp.einsum("sbc,ch->sbh", x, w_in) + b_in
    s = proj[..., :H]
    v = proj[..., H:2 * H]
    y = proj[..., 2 * H:]
    v = jnp.tanh(s) * v
    vh = v.reshape(S, B, num_heads, hd).transpose(2, 1, 0, 3)   # (NH, B, S, hd)
    att = jnp.einsum("nbqk,nbkd->nbqd", attn_weights, vh)
    att = att.transpose(2, 1, 0, 3).reshape(S, B, H)
    z = att * y
    return jnp.einsum("sbh,hc->sbc", z, w_out) + b_out


if __name__ == "__main__":
    # Small shapes consistent with the module: (seq_len, batch, channels),
    # hidden_channels, num_heads (head_dim = hidden // num_heads).
    seq_len, batch, channels, hidden, num_heads = 8, 2, 32, 32, 4

    key = jax.random.PRNGKey(0)
    kx, ka, kw1, kb1, kw2, kb2 = jax.random.split(key, 6)

    x = jax.random.normal(kx, (seq_len, batch, channels), dtype=jnp.float32)
    logits = jax.random.normal(
        ka, (num_heads, batch, seq_len, seq_len), dtype=jnp.float32)
    attn_weights = jax.nn.softmax(logits, axis=-1)   # rows sum to 1, like real attn

    # in_proj: nn.Linear(channels, 3*hidden) default-style init.
    lim_in = 1.0 / math.sqrt(channels)
    w_in = jax.random.uniform(kw1, (channels, 3 * hidden), jnp.float32,
                              -lim_in, lim_in)
    b_in = jax.random.uniform(kb1, (3 * hidden,), jnp.float32, -lim_in, lim_in)

    # out_proj: ScaledLinear(hidden, channels, initial_scale=0.05) — the 0.05
    # scale is baked into the weights at init time.
    lim_out = 1.0 / math.sqrt(hidden)
    w_out = 0.05 * jax.random.uniform(kw2, (hidden, channels), jnp.float32,
                                      -lim_out, lim_out)
    b_out = 0.05 * jax.random.uniform(kb2, (channels,), jnp.float32,
                                      -lim_out, lim_out)

    out = nonlin_attention_forward(x, attn_weights, w_in, b_in, w_out, b_out,
                                   num_heads=num_heads)
    out = jax.block_until_ready(out)

    ref = nonlin_attention_reference(x, attn_weights, w_in, b_in, w_out, b_out,
                                     num_heads=num_heads)
    assert out.shape == x.shape
    max_err = float(jnp.max(jnp.abs(out - ref)))
    # Tolerance sized for possible differences in MXU f32-matmul pass counts
    # between the Pallas kernel and the XLA reference.
    assert jnp.allclose(out, ref, atol=2e-3, rtol=2e-2), (
        f"mismatch vs reference, max abs err={max_err}")

    print("KERNEL_OK")
</pallas_src>

<mosaic_0001>
module attributes {stable_mosaic.version = 11 : i64} {
  func.func @_nonlin_attention_kernel(%arg0: i32, %arg1: memref<1x8x32xf32, #tpu.memory_space<vmem>>, %arg2: memref<1x4x8x8xf32, #tpu.memory_space<vmem>>, %arg3: memref<32x96xf32, #tpu.memory_space<vmem>>, %arg4: memref<1x96xf32, #tpu.memory_space<vmem>>, %arg5: memref<32x32xf32, #tpu.memory_space<vmem>>, %arg6: memref<1x32xf32, #tpu.memory_space<vmem>>, %arg7: memref<1x8x32xf32, #tpu.memory_space<vmem>>) attributes {dimension_semantics = [#tpu.dimension_semantics<parallel>], iteration_bounds = array<i64: 2>, scalar_prefetch = 0 : i64, scratch_operands = 0 : i64, tpu.core_type = #tpu.core_type<tc>, window_params = [{transform_indices = @transform_0, window_bounds = array<i64: 1, 8, 32>}, {transform_indices = @transform_1, window_bounds = array<i64: 1, 4, 8, 8>}, {pipeline_mode = #tpu.pipeline_mode<synchronous>, transform_indices = @transform_2, window_bounds = array<i64: 32, 96>}, {pipeline_mode = #tpu.pipeline_mode<synchronous>, transform_indices = @transform_3, window_bounds = array<i64: 1, 96>}, {pipeline_mode = #tpu.pipeline_mode<synchronous>, transform_indices = @transform_4, window_bounds = array<i64: 32, 32>}, {pipeline_mode = #tpu.pipeline_mode<synchronous>, transform_indices = @transform_5, window_bounds = array<i64: 1, 32>}, {transform_indices = @transform_6, window_bounds = array<i64: 1, 8, 32>}]} {
    %c0 = arith.constant 0 : index
    %c0_0 = arith.constant 0 : index
    %c0_1 = arith.constant 0 : index
    %0 = vector.load %arg1[%c0, %c0_0, %c0_1] : memref<1x8x32xf32, #tpu.memory_space<vmem>>, vector<1x8x32xf32>
    %1 = vector.shape_cast %0 : vector<1x8x32xf32> to vector<8x32xf32>
    %c0_2 = arith.constant 0 : index
    %c0_3 = arith.constant 0 : index
    %2 = vector.load %arg3[%c0_2, %c0_3] : memref<32x96xf32, #tpu.memory_space<vmem>>, vector<32x96xf32>
    %cst = arith.constant dense<0.000000e+00> : vector<8x96xf32>
    %3 = tpu.matmul %1, %2, %cst {dimension_numbers = #tpu.dot_dimension_numbers<[1], [0], [0], [1], [0, 0, 1, 1], [], []>} : vector<8x32xf32>, vector<32x96xf32>, vector<8x96xf32> -> vector<8x96xf32>
    %c0_4 = arith.constant 0 : index
    %c0_5 = arith.constant 0 : index
    %4 = vector.load %arg4[%c0_4, %c0_5] : memref<1x96xf32, #tpu.memory_space<vmem>>, vector<1x96xf32>
    %5 = vector.broadcast %4 : vector<1x96xf32> to vector<8x96xf32>
    %6 = arith.addf %3, %5 : vector<8x96xf32>
    %7 = vector.extract_strided_slice %6 {offsets = [0, 0], sizes = [8, 32], strides = [1, 1]} : vector<8x96xf32> to vector<8x32xf32>
    %8 = math.tanh %7 : vector<8x32xf32>
    %9 = vector.extract_strided_slice %6 {offsets = [0, 32], sizes = [8, 32], strides = [1, 1]} : vector<8x96xf32> to vector<8x32xf32>
    %10 = arith.mulf %9, %8 : vector<8x32xf32>
    %11 = vector.extract_strided_slice %6 {offsets = [0, 64], sizes = [8, 32], strides = [1, 1]} : vector<8x96xf32> to vector<8x32xf32>
    %c0_6 = arith.constant 0 : index
    %c0_7 = arith.constant 0 : index
    %c0_8 = arith.constant 0 : index
    %c0_9 = arith.constant 0 : index
    %12 = vector.load %arg2[%c0_6, %c0_7, %c0_8, %c0_9] : memref<1x4x8x8xf32, #tpu.memory_space<vmem>>, vector<1x1x8x8xf32>
    %13 = vector.shape_cast %12 : vector<1x1x8x8xf32> to vector<8x8xf32>
    %14 = vector.extract_strided_slice %10 {offsets = [0, 0], sizes = [8, 8], strides = [1, 1]} : vector<8x32xf32> to vector<8x8xf32>
    %cst_10 = arith.constant dense<0.000000e+00> : vector<8x8xf32>
    %15 = tpu.matmul %13, %14, %cst_10 {dimension_numbers = #tpu.dot_dimension_numbers<[1], [0], [0], [1], [0, 0, 1, 1], [], []>} : vector<8x8xf32>, vector<8x8xf32>, vector<8x8xf32> -> vector<8x8xf32>
    %c0_11 = arith.constant 0 : index
    %c1 = arith.constant 1 : index
    %c0_12 = arith.constant 0 : index
    %c0_13 = arith.constant 0 : index
    %16 = vector.load %arg2[%c0_11, %c1, %c0_12, %c0_13] : memref<1x4x8x8xf32, #tpu.memory_space<vmem>>, vector<1x1x8x8xf32>
    %17 = vector.shape_cast %16 : vector<1x1x8x8xf32> to vector<8x8xf32>
    %18 = vector.extract_strided_slice %10 {offsets = [0, 8], sizes = [8, 8], strides = [1, 1]} : vector<8x32xf32> to vector<8x8xf32>
    %cst_14 = arith.constant dense<0.000000e+00> : vector<8x8xf32>
    %19 = tpu.matmul %17, %18, %cst_14 {dimension_numbers = #tpu.dot_dimension_numbers<[1], [0], [0], [1], [0, 0, 1, 1], [], []>} : vector<8x8xf32>, vector<8x8xf32>, vector<8x8xf32> -> vector<8x8xf32>
    %c0_15 = arith.constant 0 : index
    %c2 = arith.constant 2 : index
    %c0_16 = arith.constant 0 : index
    %c0_17 = arith.constant 0 : index
    %20 = vector.load %arg2[%c0_15, %c2, %c0_16, %c0_17] : memref<1x4x8x8xf32, #tpu.memory_space<vmem>>, vector<1x1x8x8xf32>
    %21 = vector.shape_cast %20 : vector<1x1x8x8xf32> to vector<8x8xf32>
    %22 = vector.extract_strided_slice %10 {offsets = [0, 16], sizes = [8, 8], strides = [1, 1]} : vector<8x32xf32> to vector<8x8xf32>
    %cst_18 = arith.constant dense<0.000000e+00> : vector<8x8xf32>
    %23 = tpu.matmul %21, %22, %cst_18 {dimension_numbers = #tpu.dot_dimension_numbers<[1], [0], [0], [1], [0, 0, 1, 1], [], []>} : vector<8x8xf32>, vector<8x8xf32>, vector<8x8xf32> -> vector<8x8xf32>
    %c0_19 = arith.constant 0 : index
    %c3 = arith.constant 3 : index
    %c0_20 = arith.constant 0 : index
    %c0_21 = arith.constant 0 : index
    %24 = vector.load %arg2[%c0_19, %c3, %c0_20, %c0_21] : memref<1x4x8x8xf32, #tpu.memory_space<vmem>>, vector<1x1x8x8xf32>
    %25 = vector.shape_cast %24 : vector<1x1x8x8xf32> to vector<8x8xf32>
    %26 = vector.extract_strided_slice %10 {offsets = [0, 24], sizes = [8, 8], strides = [1, 1]} : vector<8x32xf32> to vector<8x8xf32>
    %cst_22 = arith.constant dense<0.000000e+00> : vector<8x8xf32>
    %27 = tpu.matmul %25, %26, %cst_22 {dimension_numbers = #tpu.dot_dimension_numbers<[1], [0], [0], [1], [0, 0, 1, 1], [], []>} : vector<8x8xf32>, vector<8x8xf32>, vector<8x8xf32> -> vector<8x8xf32>
    %28 = tpu.concatenate %15, %19, %23, %27 in 1 : vector<8x8xf32>, vector<8x8xf32>, vector<8x8xf32>, vector<8x8xf32> -> vector<8x32xf32>
    %29 = arith.mulf %28, %11 : vector<8x32xf32>
    %c0_23 = arith.constant 0 : index
    %c0_24 = arith.constant 0 : index
    %30 = vector.load %arg5[%c0_23, %c0_24] : memref<32x32xf32, #tpu.memory_space<vmem>>, vector<32x32xf32>
    %cst_25 = arith.constant dense<0.000000e+00> : vector<8x32xf32>
    %31 = tpu.matmul %29, %30, %cst_25 {dimension_numbers = #tpu.dot_dimension_numbers<[1], [0], [0], [1], [0, 0, 1, 1], [], []>} : vector<8x32xf32>, vector<32x32xf32>, vector<8x32xf32> -> vector<8x32xf32>
    %c0_26 = arith.constant 0 : index
    %c0_27 = arith.constant 0 : index
    %32 = vector.load %arg6[%c0_26, %c0_27] : memref<1x32xf32, #tpu.memory_space<vmem>>, vector<1x32xf32>
    %33 = vector.broadcast %32 : vector<1x32xf32> to vector<8x32xf32>
    %34 = arith.addf %31, %33 : vector<8x32xf32>
    %c0_28 = arith.constant 0 : index
    %c0_29 = arith.constant 0 : index
    %c0_30 = arith.constant 0 : index
    %35 = vector.load %arg7[%c0_28, %c0_29, %c0_30] : memref<1x8x32xf32, #tpu.memory_space<vmem>>, vector<1x8x32xf32>
    %36 = vector.shape_cast %35 : vector<1x8x32xf32> to vector<8x32xf32>
    %37 = vector.shape_cast %34 : vector<8x32xf32> to vector<1x8x32xf32>
    tpu.vector_store %arg7[%c0_28, %c0_29, %c0_30], %37 {strides = array<i32>} : memref<1x8x32xf32, #tpu.memory_space<vmem>>, vector<1x8x32xf32>,
    return
  }
  func.func @transform_0(%arg0: i32) -> (i32, i32, i32) {
    %c0_i32 = arith.constant 0 : i32
    %c0_i32_0 = arith.constant 0 : i32
    %c0_i32_1 = arith.constant 0 : i32
    return %arg0, %c0_i32, %c0_i32_0 : i32, i32, i32
  }
  func.func @transform_1(%arg0: i32) -> (i32, i32, i32, i32) {
    %c0_i32 = arith.constant 0 : i32
    %c0_i32_0 = arith.constant 0 : i32
    %c0_i32_1 = arith.constant 0 : i32
    %c0_i32_2 = arith.constant 0 : i32
    return %arg0, %c0_i32, %c0_i32_0, %c0_i32_1 : i32, i32, i32, i32
  }
  func.func @transform_2(%arg0: i32) -> (i32, i32) {
    %c0_i32 = arith.constant 0 : i32
    %c0_i32_0 = arith.constant 0 : i32
    %c0_i32_1 = arith.constant 0 : i32
    return %c0_i32, %c0_i32_0 : i32, i32
  }
  func.func @transform_3(%arg0: i32) -> (i32, i32) {
    %c0_i32 = arith.constant 0 : i32
    %c0_i32_0 = arith.constant 0 : i32
    %c0_i32_1 = arith.constant 0 : i32
    return %c0_i32, %c0_i32_0 : i32, i32
  }
  func.func @transform_4(%arg0: i32) -> (i32, i32) {
    %c0_i32 = arith.constant 0 : i32
    %c0_i32_0 = arith.constant 0 : i32
    %c0_i32_1 = arith.constant 0 : i32
    return %c0_i32, %c0_i32_0 : i32, i32
  }
  func.func @transform_5(%arg0: i32) -> (i32, i32) {
    %c0_i32 = arith.constant 0 : i32
    %c0_i32_0 = arith.constant 0 : i32
    %c0_i32_1 = arith.constant 0 : i32
    return %c0_i32, %c0_i32_0 : i32, i32
  }
  func.func @transform_6(%arg0: i32) -> (i32, i32, i32) {
    %c0_i32 = arith.constant 0 : i32
    %c0_i32_0 = arith.constant 0 : i32
    %c0_i32_1 = arith.constant 0 : i32
    return %arg0, %c0_i32, %c0_i32_0 : i32, i32, i32
  }
}

</mosaic_0001>

<bundles_post_ra>
// kernel: tpu_custom_call.1
= control target key start
LH: loop header
LB: loop body
LE: loop exit
PB: predicated region body
PF: predicated region fallthrough
CT: control target
= control target key end

     0   :  { %s1255_s0 = inlined_call_operand.hbm [shape: f32[2,8,32], index: 0, kind: input, shape index: {}]   ;;  %s1256_s1 = inlined_call_operand.hbm [shape: f32[2,4,8,8], index: 1, kind: input, shape index: {}]   ;;  %s1257_s2 = inlined_call_operand.hbm [shape: f32[32,96], index: 2, kind: input, shape index: {}]   ;;  %s1258_s3 = inlined_call_operand.vmem [shape: f32[1,96], index: 3, kind: input, shape index: {}]   ;;  %s1259_s4 = inlined_call_operand.hbm [shape: f32[32,32], index: 4, kind: input, shape index: {}]   ;;  %s1260_s5 = inlined_call_operand.vmem [shape: f32[1,32], index: 5, kind: input, shape index: {}]   ;;  %s1261_s6 = inlined_call_operand.hbm [shape: f32[2,8,32], index: 6, kind: output, shape index: {}]  }
   0x1   :  { %1267 = sst [smem:[#allocation19_spill]] %s1257_s2 }
   0x2   :  { %1268 = sst [smem:[#allocation20_spill]] %s1259_s4 }
   0x3   :  { %11 = vsyncpa [#allocation3], 0 }
   0x4   :  { %13 = vsyncpa [#allocation3 + $0x1], 0 }
   0x5   :  { %14 = vsyncpa [#allocation6], 0 }
   0x6   :  { %16 = vsyncpa [#allocation6 + $0x1], 0 }
   0x7   :  { %17 = vsyncpa [#allocation9], 0 }
   0x8   :  { %18 = vsyncpa [#allocation4], 0 }
   0x9   :  { %20 = vsyncpa [#allocation4 + $0x1], 0  ;;  %s1043_s21 = smov 0   ;;  %s1045_s22 = smov 0  }
   0xa   :  { %s1047_s23 = smov 0   ;;  %s1049_s24 = smov 0  }
   0xb LB: > { %1269 = sst [smem:[#allocation16_spill]] %s989_s23  ;;  %s1067_s28 = sadd.s32 4294967295, %s993_s24   ;;  %s993_s24 = sphi %s1049_s24, %s1283_s24   ;;  %s989_s23 = sphi %s1047_s23, %s1285_s23   ;;  %s985_s22 = sphi %s1045_s22, %s1287_s22   ;;  %s981_s21 = sphi %s1043_s21, %s1286_s21  }
   0xc   : > { %s1270_s2 = sld [smem:[#allocation19_spill]]  ;;  %p679_p0 = scmp.ge.s32.totalorder %s993_s24, 1 }
   0xd   : > { %p47_p1 = scmp.eq.s32.totalorder %s1067_s28, 0  ;;  %p193_p2 = scmp.lt.s32.totalorder %s993_s24, 3 }
   0xe   : > { %s995_s30 = smov [#allocation7]   ;;  %s1272_s4 = sld [smem:[#allocation20_spill]] }
   0xf   : > { %p1072_p3 = pnand %p679_p0, %p193_p2  ;;  %s206_s7 = sshll.u32 %s995_s30, 4  ;;  %s207_s7 = int_to_ptr.vmem [resolvable:$true] %s206_s7 }
  0x10   : > { %s996_s11 = smov [#allocation8]   ;;  %s1262_s13 = smov 128  }
  0x11   : > { %p722_p4 = pneg %p1072_p3  ;;  %s223_s12 = sshll.u32 %s996_s11, 4  ;;  %s224_s12 = int_to_ptr.vmem [resolvable:$true] %s223_s12 }
  0x12   : > { %s204_s27 = sshll.u32 %s1270_s2, 4  ;;  %s1263_s14 = smov 8   ;;  %s205_s27 = int_to_ptr.hbm [resolvable:$true] %s204_s27 }
  0x13   : > { %p723_p6 = pnand %p722_p4, %p47_p1  ;;  %s678_s15 = sadd.s32 4294967294, %s993_s24  }
  0x14   : > { %s221_s10 = sshll.u32 %s1272_s4, 4  ;;  %s1092_s16 = sadd.s32 1, %s993_s24   ;;  %s222_s10 = int_to_ptr.hbm [resolvable:$true] %s221_s10 }
  0x15   : > { %725 = dma.hbm_to_vmem [thread:$0]  (!%p723_p6), %s205_s27, 512, %s207_s7, [#allocation6], %s1262_s13, %s1262_s13, %s1263_s14  }
  0x16   : > { %728 = dma.hbm_to_vmem [thread:$0]  (!%p723_p6), %s222_s10, 512, %s224_s12, [#allocation9], %s1262_s13, %s1262_s13, %s1263_s14  }
  0x17   : > { %1273 = sst [smem:[#allocation17_spill]] %s1092_s16  ;;  %s30_s17 = ssub.s32 %s993_s24, %s1092_s16 }
  0x18   : > { %s33_s18 = sadd.s32 1, %s989_s23  ;;  %p31_p7 = scmp.eq.s32.totalorder %s30_s17, 0 }
  0x19   : > { %p40_p8 = scmp.ne.s32.totalorder %s989_s23, %s985_s22  ;;  %p41_p9 = scmp.eq.s32.totalorder %s993_s24, 0 }
  0x1a   : > { %p46_p10 = scmp.ne.s32.totalorder %s985_s22, %s981_s21  ;;  %p180_p13 = scmp.eq.s32.totalorder %s1067_s28, 1 }
  0x1b   : > { %s1103_s19 = scalar_select %p31_p7, %s989_s23, %s33_s18  }
  0x1c   : > { %p1105_p11 = por %p41_p9, %p40_p8  ;;  %p1111_p12 = por %p47_p1, %p46_p10 }
  0x1d   : > { %1274 = sst [smem:[#allocation18_spill]] %s1103_s19  ;;  %p186_p0 = scmp.eq.s32.totalorder %s678_s15, 1 }
  0x1e   : > { %p742_p2 = scmp.lt.s32.totalorder %s993_s24, 2  ;;  %s1118_s26 = sand.u32 1, %s989_s23  }
  0x1f   : > { %p1120_p4 = por %p180_p13, %p40_p8  ;;  %p1124_p6 = por %p186_p0, %p46_p10 }
  0x20   : > { %s683_s7 = sshll.u32 %s1118_s26, 3  ;;  %s684_s8 = sshll.u32 %s993_s24, 3 }
  0x21   : > { %s248_s11 = scalar_lea.hbm %s1255_s0, %s684_s8  ;;  %s244_s12 = scalar_lea.vmem [#allocation2], %s683_s7 }
  0x22   : > { %s252_s15 = sshll.u32 %s244_s12, 4  ;;  %s250_s17 = sshll.u32 %s248_s11, 4  ;;  %s253_s15 = int_to_ptr.vmem [resolvable:$true] %s252_s15  ;;  %s251_s17 = int_to_ptr.hbm [resolvable:$true] %s250_s17 }
  0x23   : > { %p1135_p7 = pnand %p742_p2, %p1105_p11  ;;  %s685_s13 = sshll.u32 %s1118_s26, 5 }
  0x24   : > { %s259_s14 = sand.u32 1, %s993_s24   ;;  %s241_s2 = scalar_lea.sflag [#allocation3], %s1118_s26 }
  0x25   : > { %s855_s4 = sshra.s32 %s251_s17, 4  ;;  %p859_p9 = pneg %p1135_p7  ;;  %s856_s4 = int_to_ptr.hbm [resolvable:$true] %s855_s4 }
  0x26   : > { %s857_s19 = scalar_lea.hbm %s856_s4, 8  ;;  %s862_s8 = scalar_lea.hbm %s1255_s0, 16 }
  0x27   : > { %p858_p8 = scmp.ne.s32.totalorder %s856_s4, %s857_s19  ;;  %p863_p11 = scmp.lt.s32.totalorder %s856_s4, %s1255_s0 }
  0x28   : > { %p864_p0 = scmp.lt.s32.totalorder %s862_s8, %s857_s19 }
  0x29   : > { %p860_p10 = pnand %p859_p9, %p858_p8 }
  0x2a   : > { %p865_p2 = por %p864_p0, %p863_p11 }
  0x2b   : > { %p861_p13 = pneg %p860_p10 }
  0x2d   : > { %p866_p5 = pnand %p865_p2, %p861_p13 }
  0x2f   : > { %869 = shalt.err (!%p866_p5)
}
  0x30   : > { %732 = dma.hbm_to_vmem [thread:$0]  (!%p1135_p7), %s251_s17, 128, %s253_s15, %s241_s2  }
  0x31   : > { %s263_s26 = scalar_lea.vmem [#allocation5], %s685_s13  ;;  %s707_s12 = sshll.u32 %s993_s24, 5 }
  0x32   : > { %s271_s11 = sshll.u32 %s263_s26, 4  ;;  %s268_s7 = scalar_lea.hbm %s1256_s1, %s707_s12  ;;  %s272_s11 = int_to_ptr.vmem [resolvable:$true] %s271_s11 }
  0x33   : > { %s269_s16 = sshll.u32 %s268_s7, 4  ;;  %s260_s4 = scalar_lea.sflag [#allocation6], %s259_s14  ;;  %s270_s16 = int_to_ptr.hbm [resolvable:$true] %s269_s16 }
  0x34   : > { %s885_s19 = sshra.s32 %s270_s16, 4  ;;  %s892_s15 = scalar_lea.hbm %s1256_s1, 64  ;;  %s886_s19 = int_to_ptr.hbm [resolvable:$true] %s885_s19 }
  0x35   : > { %s887_s8 = scalar_lea.hbm %s886_s19, 32  ;;  %p893_p13 = scmp.lt.s32.totalorder %s886_s19, %s1256_s1 }
  0x36   : > { %p888_p5 = scmp.ne.s32.totalorder %s886_s19, %s887_s8  ;;  %p894_p11 = scmp.lt.s32.totalorder %s892_s15, %s887_s8 }
  0x38   : > { %p890_p8 = pnand %p888_p5, %p859_p9  ;;  %p895_p0 = por %p894_p11, %p893_p13 }
  0x3a   : > { %p891_p10 = pneg %p890_p8 }
  0x3c   : > { %p896_p2 = pnand %p895_p0, %p891_p10 }
  0x3e   : > { %899 = shalt.err (!%p896_p2)
}
  0x3f   : > { %s1280_s23 = smov 8   ;;  %s1281_s14 = smov 128  }
  0x40   : > { %735 = dma.hbm_to_vmem [thread:$0]  (!%p1135_p7), %s270_s16, 512, %s272_s11, %s260_s4, %s1281_s14, %s1281_s14, %s1280_s23  }
  0x41   : > { %283 = sbr.rel (%p1072_p3) target bundleno = 850 (0x352), region = 44  ;;  %s1176_s10 = sand.u32 (!%p1072_p3), 1, %s985_s22  }
  0x42   : > { %s689_s26 = sshll.u32 (!%p1072_p3), %s1176_s10, 3  ;;  %s286_s12 = scalar_lea.sflag (!%p1072_p3), [#allocation3], %s1176_s10 }
  0x43   : > { %s289_s20 = scalar_lea.vmem (!%p1072_p3), [#allocation2], %s689_s26 }
  0x46   : > { %960 = dma.done.wait (%p1111_p12), %s286_s12, 128  }
  0x47   : > { %962 = vsyncadd (%p1111_p12), %s286_s12, 4294967168  ;;  %s295_s29 = sand.u32 1, %s1067_s28   ;;  %s690_s16 = sshll.u32 %s1176_s10, 5 }
  0x48   : > { %s296_s18 = scalar_lea.sflag [#allocation6], %s295_s29  ;;  %s1188_s11 = scalar_lea.vmem [#allocation5], %s690_s16 }
  0x49   : > { %964 = dma.done.wait (%p1111_p12), %s296_s18, 512  }
  0x4a   : > { %966 = vsyncadd (%p1111_p12), %s296_s18, 4294966784 }
  0x4b   : > { %968 = dma.done.wait (%p47_p1), [#allocation6], 512  }
  0x4c   : > { %970 = vsyncadd (%p47_p1), [#allocation6], 4294966784 }
  0x4d   : > { %972 = dma.done.wait (%p47_p1), [#allocation9], 512  }
  0x4e   : > { %974 = vsyncadd (%p47_p1), [#allocation9], 4294966784  ;;  %v348_v0 = vld [vmem:[#allocation7 + $0x18] sm:$0xff]  ;;  %v347_v1 = vld [vmem:[#allocation7 + $0x10] sm:$0xff]  ;;  %vm353_vm0 = vcmask 261120   ;;  %s999_s4 = smov 32  }
  0x4f   : > { %369 = vmatpush.msra.mxu0 %v348_v0  ;;  %v346_v2 = vld [vmem:[#allocation7 + $0x8] sm:$0xff]  ;;  %v345_v3 = vld [vmem:[#allocation7] sm:$0xff]  ;;  %v344_v4 = vld [vmem:[%s289_s20] sm:$0xff]  ;;  %s1000_s19 = smov 72   ;;  %s1001_s8 = smov 88   ;;  %vm388_vm1 = vcmask 64512  }
  0x50   : > { %v791_v5 = vld [vmem:[%s1258_s3] ss:$0 sm:$0xff]  ;;  %s1002_s2 = smov 96   ;;  %s1003_s13 = smov 80   ;;  %v696_v11 = vld [vmem:[%s1188_s11 + $0x8] sm:$0xff]  ;;  %v383_v14 = vld [vmem:[%s1188_s11] sm:$0xff] }
  0x51   : > { %370 = vmatpush.msra.mxu0 %v347_v1  ;;  %v698_v16 = vld [vmem:[%s1188_s11 + $0x10] sm:$0xff]  ;;  %v700_v18 = vld [vmem:[%s1188_s11 + $0x18] sm:$0xff]  ;;  %s1004_s15 = smov 8   ;;  %s1005_s17 = smov 24   ;;  %v519_v25 = vld [vmem:[#allocation8 + $0x8] sm:$0xff]  ;;  %vm509_vm2 = vcmask 130048  }
  0x52   : > { %s1006_s9 = smov 64   ;;  %s1007_s23 = smov 16   ;;  %v521_v23 = vld [vmem:[#allocation8 + $0x18] sm:$0xff]  ;;  %v520_v24 = vld [vmem:[#allocation8 + $0x10] sm:$0xff]  ;;  %v518_v26 = vld [vmem:[#allocation8] sm:$0xff]  ;;  %vm511_vm3 = vcmask 195584  }
  0x53   : > { %371 = vmatpush.msra.mxu0 %v346_v2  ;;  %s704_s14 = sshll.u32 %s1067_s28, 3  ;;  %v792_v35 = vld [vmem:[%s1260_s5] ss:$0 sm:$0xff]  ;;  %s343_s11 = scalar_lea.vmem [#allocation10], %s689_s26 }
  0x54   : > { %s561_s29 = scalar_lea.hbm %s1261_s6, %s704_s14  ;;  %s563_s25 = sshll.u32 %s343_s11, 4  ;;  %s564_s25 = int_to_ptr.vmem [resolvable:$true] %s563_s25 }
  0x55   : > { %372 = vmatpush.msra.mxu0 %v345_v3  ;;  %s565_s7 = sshll.u32 %s561_s29, 4  ;;  %s551_s28 = scalar_lea.sflag [#allocation4], %s1176_s10  ;;  %s566_s7 = int_to_ptr.hbm [resolvable:$true] %s565_s7 }
  0x56   : > { %694 = vmatmul.msk.f32.vlgmr.msra.gmra.mxu0 %vm353_vm0, %v344_v4  ;;  %s935_s26 = scalar_lea.hbm %s1261_s6, 16 }
  0xd3   : > { %v374_v6 = vpop.f32.mrf.mxu0 }
  0xd4   : > { %v375_v7 = vadd.f32 %v791_v5, %v374_v6 }
  0xd6   : > { %793 = vtanh.f32 %v375_v7 }
  0xdc   : > { %v794_v8 = vpop.eup %793 }
  0xdd   : > { %379 = vrot.lane.b32.xlu0 %v794_v8, %s999_s4  ;;  %s929_s4 = sshra.s32 %s566_s7, 4  ;;  %s930_s4 = int_to_ptr.hbm [resolvable:$true] %s929_s4 }
  0xde   : > { %p936_p7 = scmp.lt.s32.totalorder %s930_s4, %s1261_s6 }
 0x14f   : > { %v380_v9 = vpop.permute.xlu0 %379 }
 0x150   : > { %v382_v10 = vmul.f32 %v380_v9, %v375_v7 }
 0x152   : > { %470 = vrot.lane.b32.xlu2 %v382_v10, %s1000_s19  ;;  %414 = vrot.lane.b32.xlu1 %v382_v10, %s1001_s8  ;;  %s931_s19 = scalar_lea.hbm %s930_s4, 8 }
 0x153   : > { %385 = vrot.lane.b32.xlu0 %v382_v10, %s1002_s2  ;;  %p932_p1 = scmp.ne.s32.totalorder %s930_s4, %s931_s19  ;;  %p937_p9 = scmp.lt.s32.totalorder %s935_s26, %s931_s19 }
 0x155   : > { %p933_p3 = pnand %p932_p1, %p1120_p4  ;;  %p938_p5 = por %p937_p9, %p936_p7 }
 0x157   : > { %p934_p12 = pneg %p933_p3 }
 0x159   : > { %p939_p8 = pnand %p938_p5, %p934_p12 }
 0x15a   : > { %442 = vrot.lane.b32.xlu1 %v382_v10, %s1003_s13 }
 0x1ac   : > { %v471_v15 = vpop.permute.xlu2 %470 }
 0x1c4   : > { %v415_v12 = vpop.permute.xlu1 %414 }
 0x1c5   : > { %v386_v13 = vpop.permute.xlu0 %385  ;;  %435 = vmatpush.msra.mxu2 %v415_v12 }
 0x1c6   : > { %407 = vmatpush.msra.mxu1 %v386_v13  ;;  %697 = vmatmul.msk.f32.vlgmr.msra.gmra.mxu2 %vm388_vm1, %v696_v11 }
 0x1c7   : > { %695 = vmatmul.msk.f32.vlgmr.msra.gmra.mxu1 %vm388_vm1, %v383_v14  ;;  %541 = vmatpush.msrb.mxu2 %v521_v23 }
 0x1c8   : > { %491 = vmatpush.msrb.mxu1 %v471_v15 }
 0x1c9   : > { %542 = vmatpush.msrb.mxu2 %v520_v24 }
 0x1cb   : > { %543 = vmatpush.msrb.mxu2 %v519_v25 }
 0x1cc   : > { %v443_v17 = vpop.permute.xlu1 %442 }
 0x1cd   : > { %463 = vmatpush.msra.mxu3 %v443_v17  ;;  %544 = vmatpush.msrb.mxu2 %v518_v26 }
 0x1ce   : > { %699 = vmatmul.msk.f32.vlgmr.msra.gmra.mxu3 %vm388_vm1, %v698_v16 }
 0x1cf   : > { %701 = vmatmul.msk.f32.vlgmr.msrb.gmra.mxu1 %vm388_vm1, %v700_v18 }
 0x244   : > { %v409_v19 = vpop.f32.mrf.mxu1 }
 0x249   : > { %v437_v20 = vpop.f32.mrf.mxu2 }
 0x24a   : > { %497 = vrot.lane.b32.xlu2 %v437_v20, %s1004_s15 }
 0x24c   : > { %v493_v21 = vpop.f32.mrf.mxu1 }
 0x24d   : > { %505 = vrot.lane.b32.xlu1 %v493_v21, %s1005_s17 }
 0x251   : > { %v465_v22 = vpop.f32.mrf.mxu3 }
 0x252   : > { %514 = vrot.lane.b32.xlu2 %v375_v7, %s1006_s9  ;;  %501 = vrot.lane.b32.xlu0 %v465_v22, %s1007_s23 }
 0x2a4   : > { %v498_v27 = vpop.permute.xlu2 %497 }
 0x2a5   : > { %v508_v29 = vsel %vm388_vm1, %v409_v19, %v498_v27 }
 0x2ac   : > { %v515_v32 = vpop.permute.xlu2 %514 }
 0x2bf   : > { %v506_v28 = vpop.permute.xlu1 %505 }
 0x2c4   : > { %v502_v30 = vpop.permute.xlu0 %501 }
 0x2c5   : > { %v510_v31 = vsel %vm509_vm2, %v508_v29, %v502_v30 }
 0x2c6   : > { %v512_v33 = vsel %vm511_vm3, %v510_v31, %v506_v28 }
 0x2c7   : > { %v517_v34 = vmul.f32 %v515_v32, %v512_v33 }
 0x2c9   : > { %702 = vmatmul.msk.f32.vlgmr.msrb.gmra.mxu2 %vm353_vm0, %v517_v34 }
 0x34c   : > { %v546_v36 = vpop.f32.mrf.mxu2 }
 0x34d   : > { %v547_v37 = vadd.f32 %v792_v35, %v546_v36 }
 0x34f   : > { %549 = vst.msk [vmem:[%s343_s11] sm:$0xff] %vm353_vm0, %v547_v37 }
 0x350   : > { %942 = shalt.err (!%p939_p8)
}
 0x351   : > { %720 = dma.vmem_to_hbm [thread:$0]  (%p1120_p4), %s564_s25, 128, %s566_s7, %s551_s28  }
 0x352 PF: > { %s577_s10 = sand.u32 1, %s981_s21   ;;  %p1282_p10 = scmp.ge.s32.totalorder %s993_s24, 2 }
 0x353   : > { %s578_s17 = scalar_lea.sflag [#allocation4], %s577_s10 }
 0x354   : > { %p737_p13 = pnand %p1282_p10, %p1124_p6 }
 0x356   : > { %p738_p11 = pneg %p737_p13 }
 0x358   : > { %976 = dma.done.wait (%p738_p11), %s578_s17, 128  }
 0x359   : > { %978 = vsyncadd (%p738_p11), %s578_s17, 4294967168  ;;  %s1283_s24 = sld [smem:[#allocation17_spill]]  ;;  %s1286_s21 = smov %s985_s22 }
 0x35a   : > { %s1284_s9 = sld [smem:[#allocation16_spill]] }
 0x35b   : > { %s1285_s23 = sld [smem:[#allocation18_spill]] }
 0x35f   : > { %p23_p0 = scmp.ge.s32.totalorder %s1283_s24, 4  }
 0x360   : > { %s1287_s22 = smov %s1284_s9 }
 0x361   :  { %25 = sbr.rel (!%p23_p0) target bundleno = 11 (0xb), region = 113 }
 0x366   :  { %584 = vsyncpa [#allocation3], 1 }
 0x367   :  { %586 = vsyncpa [#allocation3 + $0x1], 1 }
 0x368   :  { %587 = vsyncpa [#allocation6], 1 }
 0x369   :  { %589 = vsyncpa [#allocation6 + $0x1], 1 }
 0x36a   :  { %590 = vsyncpa [#allocation9], 1 }
 0x36b   :  { %591 = vsyncpa [#allocation4], 1 }
 0x36c   :  { %593 = vsyncpa [#allocation4 + $0x1], 1 }

</bundles_post_ra>
